<compile_context>
chip_gen: v7x
topology: tpu7x:2x2x1
jax: 0.10.0
libtpu: 0.0.40
codegen_flags: <defaults>
</compile_context>

<pallas_src>
import functools
import math

import jax
import jax.numpy as jnp
from jax.experimental import pallas as pl
from jax.experimental.pallas import tpu as pltpu

_LANES = 128
_TARGET_TILE_BYTES = 4 * 1024 * 1024   # per operand, per pipeline buffer


def _num_tensorcores():
    """2 TensorCores per chip on v7x, 1 on earlier generations."""
    try:
        kind = jax.devices()[0].device_kind.lower()
    except Exception:
        return 1
    return 2 if "v7" in kind else 1


def _sse_kernel(x_ref, y_ref, o_ref, acc_ref, *,
                tile_rows, tiles_per_core, valid_rows, needs_mask, acc_rows):
    """Accumulates per-lane partial sums of (x - y)^2 into acc_ref."""
    c = pl.program_id(0)   # core split ("parallel"; extent 1 on single-TC chips)
    i = pl.program_id(1)   # reduction over row tiles ("arbitrary")

    @pl.when(i == 0)
    def _init():
        acc_ref[...] = jnp.zeros_like(acc_ref)

    d = x_ref[...].astype(jnp.float32) - y_ref[...].astype(jnp.float32)
    sq = d * d

    def _accumulate(vals):
        if acc_rows == 8:
            # Split the sublane axis at its natural (8-row) tile boundary and
            # add vreg-by-vreg (pure VPU adds); the cross-sublane reduce is
            # deferred to the tiny wrapper epilogue.
            acc_ref[...] += vals.reshape(tile_rows // 8, 8, _LANES).sum(axis=0)
        else:
            acc_ref[...] += jnp.sum(vals, axis=0, keepdims=True)

    if needs_mask:
        tile_idx = c * tiles_per_core + i
        row0 = tile_idx * tile_rows
        is_edge = row0 + tile_rows > valid_rows

        @pl.when(is_edge)
        def _edge():
            # Zero rows beyond the true slab extent: the undefined region of a
            # partial edge block, or an entire tile when this core's logical
            # tile index overshoots (its DMA is clamped in the index_map).
            # Mask BEFORE summing so garbage NaN/Inf never reaches the acc.
            row_ids = row0 + jax.lax.broadcasted_iota(jnp.int32, sq.shape, 0)
            _accumulate(jnp.where(row_ids < valid_rows, sq, 0.0))

        @pl.when(jnp.logical_not(is_edge))
        def _interior():
            _accumulate(sq)
    else:
        _accumulate(sq)

    @pl.when(i == pl.num_programs(1) - 1)
    def _finalize():
        o_ref[0] = acc_ref[...]


def _sum_squared_error(x2, y2, rows, num_cores, max_tile_rows):
    """Pallas sum((x2 - y2)^2) over a lane-dense (rows, 128) slab -> f32 scalar."""
    itemsize = max(x2.dtype.itemsize, y2.dtype.itemsize)
    if max_tile_rows is None:
        # ~4 MiB per operand per buffer: 8192 rows f32, 16384 rows bf16.
        max_tile_rows = max(8, (_TARGET_TILE_BYTES // (_LANES * itemsize)) // 8 * 8)

    # Block is either the full slab (small inputs) or max_tile_rows (mult of 8).
    tile_rows = rows if rows <= max_tile_rows else max_tile_rows
    total_tiles = -(-rows // tile_rows)
    tiles_per_core = -(-total_tiles // num_cores)
    needs_mask = (rows % tile_rows != 0) or (total_tiles % num_cores != 0)
    acc_rows = 8 if tile_rows % 8 == 0 else 1

    def in_index_map(c, i):
        # Clamp so the DMA never walks past the last block; overshooting tiles
        # are fully masked inside the kernel.
        t = jnp.minimum(c * tiles_per_core + i, total_tiles - 1)
        return (t, 0)

    kernel = functools.partial(
        _sse_kernel,
        tile_rows=tile_rows,
        tiles_per_core=tiles_per_core,
        valid_rows=rows,
        needs_mask=needs_mask,
        acc_rows=acc_rows,
    )

    n_main = rows * _LANES
    bytes_accessed = n_main * (x2.dtype.itemsize + y2.dtype.itemsize)
    bytes_accessed += num_cores * acc_rows * _LANES * 4  # partial-sum output

    partials = pl.pallas_call(
        kernel,
        out_shape=jax.ShapeDtypeStruct((num_cores, acc_rows, _LANES), jnp.float32),
        grid_spec=pltpu.PrefetchScalarGridSpec(
            num_scalar_prefetch=0,
            grid=(num_cores, tiles_per_core),
            in_specs=[
                pl.BlockSpec((tile_rows, _LANES), in_index_map),
                pl.BlockSpec((tile_rows, _LANES), in_index_map),
            ],
            out_specs=pl.BlockSpec((1, acc_rows, _LANES), lambda c, i: (c, 0, 0)),
            scratch_shapes=[pltpu.VMEM((acc_rows, _LANES), jnp.float32)],
        ),
        compiler_params=pltpu.CompilerParams(
            # On v7x the leading axis (extent 2) shards across the two
            # TensorCores; on v5e/v6e it has extent 1 (no waste).
            # TODO(synk): verify megacore sharding in a v7x trace; switch the
            # leading axis to pltpu.CORE_PARALLEL if "parallel" is not honored.
            dimension_semantics=("parallel", "arbitrary"),
            # 2 operands x 2 pipeline buffers x ~4 MiB tiles ~= 16 MiB; raise
            # the scoped limit past v5e's 16 MiB default while staying well
            # under v7x's 64 MiB physical VMEM.
            vmem_limit_bytes=32 * 1024 * 1024,
        ),
        cost_estimate=pl.CostEstimate(
            flops=3 * n_main, transcendentals=0, bytes_accessed=bytes_accessed),
    )(x2, y2)

    # Tiny epilogue: cross-sublane / cross-lane / cross-core reduction.
    return jnp.sum(partials)


def mse_loss(inputs, outputs, *, num_cores=None, max_tile_rows=None):
    """Pallas equivalent of nn.MSELoss()(inputs, outputs) -> scalar f32."""
    assert inputs.shape == outputs.shape, (inputs.shape, outputs.shape)
    n = math.prod(inputs.shape)

    if num_cores is None:
        num_cores = _num_tensorcores()

    x = inputs.reshape(-1)
    y = outputs.reshape(-1)

    rows = n // _LANES
    n_main = rows * _LANES

    sse = jnp.zeros((), jnp.float32)

    if rows > 0:
        if n_main == n:
            xm, ym = x, y                       # free reshape, no copy
        else:
            xm, ym = x[:n_main], y[:n_main]     # 128-aligned prefix
        sse = sse + _sum_squared_error(
            xm.reshape(rows, _LANES), ym.reshape(rows, _LANES),
            rows, num_cores, max_tile_rows)

    if n_main < n:
        # <=127-element tail handled in plain XLA; O(128) work beats the old
        # full padded copy of both operands.
        dt = x[n_main:].astype(jnp.float32) - y[n_main:].astype(jnp.float32)
        sse = sse + jnp.sum(dt * dt)

    # NOTE: n == 0 divides by zero (NaN), matching torch.nn.MSELoss.
    return sse / n


if __name__ == "__main__":
    key = jax.random.PRNGKey(0)
    keys = jax.random.split(key, 10)

    # 1) Typical small NCHW-like activations (128-aligned element count).
    shape = (2, 4, 16, 16)
    a = jax.random.normal(keys[0], shape, dtype=jnp.float32)
    b = jax.random.normal(keys[1], shape, dtype=jnp.float32)
    loss = jax.block_until_ready(mse_loss(a, b))
    ref = jnp.mean((a - b) ** 2)
    assert jnp.allclose(loss, ref, rtol=1e-5, atol=1e-6), (loss, ref)

    # 2) Non-128-aligned element count > 128 (kernel prefix + XLA tail).
    shape2 = (3, 5, 17)   # 255 elements
    a2 = jax.random.normal(keys[2], shape2, dtype=jnp.float32)
    b2 = jax.random.normal(keys[3], shape2, dtype=jnp.float32)
    loss2 = jax.block_until_ready(mse_loss(a2, b2))
    ref2 = jnp.mean((a2 - b2) ** 2)
    assert jnp.allclose(loss2, ref2, rtol=1e-5, atol=1e-6), (loss2, ref2)

    # 3) Fewer than 128 elements (all-tail XLA path, no kernel launch).
    shape3 = (3, 5, 7)    # 105 elements
    a3 = jax.random.normal(keys[4], shape3, dtype=jnp.float32)
    b3 = jax.random.normal(keys[5], shape3, dtype=jnp.float32)
    loss3 = jax.block_until_ready(mse_loss(a3, b3))
    ref3 = jnp.mean((a3 - b3) ** 2)
    assert jnp.allclose(loss3, ref3, rtol=1e-5, atol=1e-6), (loss3, ref3)

    # 4) Multi-tile grid with a partial edge tile and an overshooting core:
    #    forces the masked-edge and clamped-DMA paths on any chip.
    shape4 = (4, 4, 40, 40)   # 25600 elements -> 200 rows, 72-row tiles
    a4 = jax.random.normal(keys[6], shape4, dtype=jnp.float32)
    b4 = jax.random.normal(keys[7], shape4, dtype=jnp.float32)
    loss4 = jax.block_until_ready(
        mse_loss(a4, b4, num_cores=2, max_tile_rows=72))
    ref4 = jnp.mean((a4 - b4) ** 2)
    assert jnp.allclose(loss4, ref4, rtol=1e-5, atol=1e-6), (loss4, ref4)

    # 5) bf16 inputs: native-dtype DMA, f32 in-kernel math.
    a5 = a.astype(jnp.bfloat16)
    b5 = b.astype(jnp.bfloat16)
    loss5 = jax.block_until_ready(mse_loss(a5, b5))
    ref5 = jnp.mean((a5.astype(jnp.float32) - b5.astype(jnp.float32)) ** 2)
    assert jnp.allclose(loss5, ref5, rtol=1e-3, atol=1e-4), (loss5, ref5)

    print("KERNEL_OK")
</pallas_src>

<mosaic_0001>
module attributes {stable_mosaic.version = 11 : i64} {
  func.func @_sse_kernel(%arg0: i32, %arg1: i32, %arg2: memref<16x128xf32, #tpu.memory_space<vmem>>, %arg3: memref<16x128xf32, #tpu.memory_space<vmem>>, %arg4: memref<1x8x128xf32, #tpu.memory_space<vmem>>, %arg5: memref<8x128xf32, #tpu.memory_space<vmem>>) attributes {dimension_semantics = [#tpu.dimension_semantics<parallel>, #tpu.dimension_semantics<arbitrary>], iteration_bounds = array<i64: 1, 1>, scalar_prefetch = 0 : i64, scratch_operands = 1 : i64, tpu.core_type = #tpu.core_type<tc>, window_params = [{transform_indices = @transform_0, window_bounds = array<i64: 16, 128>}, {transform_indices = @transform_1, window_bounds = array<i64: 16, 128>}, {transform_indices = @transform_2, window_bounds = array<i64: 1, 8, 128>}]} {
    %c0_i32 = arith.constant 0 : i32
    %0 = arith.cmpi eq, %arg1, %c0_i32 : i32
    %1 = arith.extui %0 : i1 to i32
    %c0_i32_0 = arith.constant 0 : i32
    %2 = arith.cmpi ne, %1, %c0_i32_0 : i32
    scf.if %2 {
      %cst_10 = arith.constant 0.000000e+00 : f32
      %15 = vector.broadcast %cst_10 : f32 to vector<8x128xf32>
      %c0_11 = arith.constant 0 : index
      %c0_12 = arith.constant 0 : index
      %16 = vector.load %arg5[%c0_11, %c0_12] : memref<8x128xf32, #tpu.memory_space<vmem>>, vector<8x128xf32>
      tpu.vector_store %arg5[%c0_11, %c0_12], %15 {strides = array<i32>} : memref<8x128xf32, #tpu.memory_space<vmem>>, vector<8x128xf32>,
    } else {
    }
    %c0 = arith.constant 0 : index
    %c0_1 = arith.constant 0 : index
    %3 = vector.load %arg2[%c0, %c0_1] : memref<16x128xf32, #tpu.memory_space<vmem>>, vector<16x128xf32>
    %c0_2 = arith.constant 0 : index
    %c0_3 = arith.constant 0 : index
    %4 = vector.load %arg3[%c0_2, %c0_3] : memref<16x128xf32, #tpu.memory_space<vmem>>, vector<16x128xf32>
    %5 = arith.subf %3, %4 : vector<16x128xf32>
    %6 = arith.mulf %5, %5 : vector<16x128xf32>
    %c0_4 = arith.constant 0 : index
    %c0_5 = arith.constant 0 : index
    %7 = vector.load %arg5[%c0_4, %c0_5] : memref<8x128xf32, #tpu.memory_space<vmem>>, vector<8x128xf32>
    %8 = vector.shape_cast %6 : vector<16x128xf32> to vector<2x8x128xf32>
    %cst = arith.constant dense<0.000000e+00> : vector<8x128xf32>
    %9 = vector.multi_reduction <add>, %8, %cst [0] : vector<2x8x128xf32> to vector<8x128xf32>
    %10 = arith.addf %7, %9 : vector<8x128xf32>
    %c0_6 = arith.constant 0 : index
    %c0_7 = arith.constant 0 : index
    %11 = vector.load %arg5[%c0_6, %c0_7] : memref<8x128xf32, #tpu.memory_space<vmem>>, vector<8x128xf32>
    tpu.vector_store %arg5[%c0_6, %c0_7], %10 {strides = array<i32>} : memref<8x128xf32, #tpu.memory_space<vmem>>, vector<8x128xf32>,
    %c0_i32_8 = arith.constant 0 : i32
    %12 = arith.cmpi eq, %arg1, %c0_i32_8 : i32
    %13 = arith.extui %12 : i1 to i32
    %c0_i32_9 = arith.constant 0 : i32
    %14 = arith.cmpi ne, %13, %c0_i32_9 : i32
    scf.if %14 {
      %c0_10 = arith.constant 0 : index
      %c0_11 = arith.constant 0 : index
      %15 = vector.load %arg5[%c0_10, %c0_11] : memref<8x128xf32, #tpu.memory_space<vmem>>, vector<8x128xf32>
      %c0_12 = arith.constant 0 : index
      %c0_13 = arith.constant 0 : index
      %c0_14 = arith.constant 0 : index
      %16 = vector.load %arg4[%c0_12, %c0_13, %c0_14] : memref<1x8x128xf32, #tpu.memory_space<vmem>>, vector<1x8x128xf32>
      %17 = vector.shape_cast %16 : vector<1x8x128xf32> to vector<8x128xf32>
      %18 = vector.shape_cast %15 : vector<8x128xf32> to vector<1x8x128xf32>
      tpu.vector_store %arg4[%c0_12, %c0_13, %c0_14], %18 {strides = array<i32>} : memref<1x8x128xf32, #tpu.memory_space<vmem>>, vector<1x8x128xf32>,
    } else {
    }
    return
  }
  func.func @transform_0(%arg0: i32, %arg1: i32) -> (i32, i32) {
    %c1_i32 = arith.constant 1 : i32
    %0 = arith.muli %arg0, %c1_i32 : i32
    %1 = arith.addi %0, %arg1 : i32
    %c0_i32 = arith.constant 0 : i32
    %2 = arith.minsi %1, %c0_i32 : i32
    %c0_i32_0 = arith.constant 0 : i32
    %c0_i32_1 = arith.constant 0 : i32
    return %2, %c0_i32_0 : i32, i32
  }
  func.func @transform_1(%arg0: i32, %arg1: i32) -> (i32, i32) {
    %c1_i32 = arith.constant 1 : i32
    %0 = arith.muli %arg0, %c1_i32 : i32
    %1 = arith.addi %0, %arg1 : i32
    %c0_i32 = arith.constant 0 : i32
    %2 = arith.minsi %1, %c0_i32 : i32
    %c0_i32_0 = arith.constant 0 : i32
    %c0_i32_1 = arith.constant 0 : i32
    return %2, %c0_i32_0 : i32, i32
  }
  func.func @transform_2(%arg0: i32, %arg1: i32) -> (i32, i32, i32) {
    %c0_i32 = arith.constant 0 : i32
    %c0_i32_0 = arith.constant 0 : i32
    %c0_i32_1 = arith.constant 0 : i32
    return %arg0, %c0_i32, %c0_i32_0 : i32, i32, i32
  }
}

</mosaic_0001>

<bundles_post_ra>
// kernel: tpu_custom_call.1
= control target key start
LH: loop header
LB: loop body
LE: loop exit
PB: predicated region body
PF: predicated region fallthrough
CT: control target
= control target key end

     0   :  { %7 = vsyncpa [#allocation4], 0  ;;  %s235_s0 = inlined_call_operand.hbm [shape: f32[16,128], index: 0, kind: input, shape index: {}]   ;;  %s236_s1 = inlined_call_operand.hbm [shape: f32[16,128], index: 1, kind: input, shape index: {}]   ;;  %s237_s2 = inlined_call_operand.hbm [shape: f32[1,8,128], index: 2, kind: output, shape index: {}]  }
   0x1   :  { %8 = vsyncpa [#allocation7], 0 }
   0x2   :  { %9 = vsyncpa [#allocation5], 0  ;;  %s179_s9 = smov [#allocation3]   ;;  %s107_s13 = scalar_lea.hbm %s235_s0, 256 }
   0x3   :  { %s21_s10 = sshll.u32 %s179_s9, 4  ;;  %p108_p0 = scmp.ne.s32.totalorder %s235_s0, %s107_s13  ;;  %s22_s10 = int_to_ptr.vmem [resolvable:$true] %s21_s10 }
   0x4   :  { %p111_p1 = scmp.lt.u32.totalorder %s107_s13, %s235_s0 }
   0x6   :  { %p113_p2 = pnand %p111_p1, %p108_p0 }
   0x8   :  { %116 = shalt.err (!%p113_p2)
}
   0x9   :  { %s117_s18 = scalar_lea.vmem %s22_s10, 256  ;;  %p122_p4 = scmp.lt.s32.totalorder %s22_s10, %s22_s10 }
   0xa   :  { %p118_p3 = scmp.ne.s32.totalorder %s22_s10, %s117_s18  ;;  %p123_p5 = scmp.lt.s32.totalorder %s117_s18, %s117_s18 }
   0xc   :  { %p124_p6 = por %p123_p5, %p122_p4 }
   0xe   :  { %p125_p7 = pnand %p124_p6, %p118_p3 }
  0x10   :  { %128 = shalt.err (!%p125_p7)
}
  0x11   :  { %s180_s19 = smov 128   ;;  %s181_s20 = smov 8  }
  0x12   :  { %27 = dma.hbm_to_vmem [thread:$0]  %s235_s0, 256, %s22_s10, [#allocation4], %s180_s19, %s180_s19, %s181_s20  }
  0x13   :  { %s182_s23 = smov [#allocation6]   ;;  %s129_s27 = scalar_lea.hbm %s236_s1, 256 }
  0x14   :  { %s39_s24 = sshll.u32 %s182_s23, 4  ;;  %p130_p8 = scmp.ne.s32.totalorder %s236_s1, %s129_s27  ;;  %s40_s24 = int_to_ptr.vmem [resolvable:$true] %s39_s24 }
  0x15   :  { %p133_p9 = scmp.lt.u32.totalorder %s129_s27, %s236_s1 }
  0x17   :  { %p135_p10 = pnand %p133_p9, %p130_p8 }
  0x19   :  { %138 = shalt.err (!%p135_p10)
}
  0x1a   :  { %s139_s4 = scalar_lea.vmem %s40_s24, 256  ;;  %p144_p12 = scmp.lt.s32.totalorder %s40_s24, %s40_s24 }
  0x1b   :  { %p140_p11 = scmp.ne.s32.totalorder %s40_s24, %s139_s4  ;;  %p145_p13 = scmp.lt.s32.totalorder %s139_s4, %s139_s4 }
  0x1d   :  { %p146_p0 = por %p145_p13, %p144_p12 }
  0x1f   :  { %p147_p1 = pnand %p146_p0, %p140_p11 }
  0x21   :  { %150 = shalt.err (!%p147_p1)
}
  0x22   :  { %45 = dma.hbm_to_vmem [thread:$0]  %s236_s1, 256, %s40_s24, [#allocation7], %s180_s19, %s180_s19, %s181_s20  }
  0x23   :  { %173 = dma.done.wait [#allocation4], 256  }
  0x24   :  { %174 = vsyncadd [#allocation4], 4294967040 }
  0x25   :  { %175 = dma.done.wait [#allocation7], 256  }
  0x26   :  { %176 = vsyncadd [#allocation7], 4294967040  ;;  %v65_v0 = vld [vmem:[#allocation3] sm:$0xff]  ;;  %v66_v1 = vld [vmem:[#allocation3 + $0x8] sm:$0xff]  ;;  %s183_s6 = smov [#allocation8]  }
  0x27   :  { %v67_v2 = vld [vmem:[#allocation6] sm:$0xff]  ;;  %v68_v3 = vld [vmem:[#allocation6 + $0x8] sm:$0xff]  ;;  %s88_s7 = sshll.u32 %s183_s6, 4  ;;  %s89_s7 = int_to_ptr.vmem [resolvable:$true] %s88_s7 }
  0x28   :  { %v69_v4 = vsub.f32 %v65_v0, %v67_v2  ;;  %v70_v5 = vsub.f32 %v66_v1, %v68_v3  ;;  %s151_s8 = scalar_lea.vmem %s89_s7, 128  ;;  %p156_p3 = scmp.lt.s32.totalorder %s89_s7, %s89_s7 }
  0x29   :  { %p152_p2 = scmp.ne.s32.totalorder %s89_s7, %s151_s8  ;;  %p157_p4 = scmp.lt.s32.totalorder %s151_s8, %s151_s8 }
  0x2a   :  { %v71_v6 = vmul.f32 %v69_v4, %v69_v4  ;;  %v72_v7 = vmul.f32 %v70_v5, %v70_v5 }
  0x2b   :  { %p158_p5 = por %p157_p4, %p156_p3 }
  0x2c   :  { %v74_v8 = vadd.f32 %v72_v7, %v71_v6 }
  0x2d   :  { %p159_p6 = pnand %p158_p5, %p152_p2 }
  0x2e   :  { %81 = vst [vmem:[#allocation8] sm:$0xff] %v74_v8 }
  0x2f   :  { %162 = shalt.err (!%p159_p6)
}
  0x30   :  { %s163_s10 = scalar_lea.hbm %s237_s2, 128 }
  0x31   :  { %p164_p7 = scmp.ne.s32.totalorder %s237_s2, %s163_s10  ;;  %p167_p8 = scmp.lt.u32.totalorder %s163_s10, %s237_s2 }
  0x33   :  { %p169_p9 = pnand %p167_p8, %p164_p7 }
  0x35   :  { %172 = shalt.err (!%p169_p9)
}
  0x36   :  { %91 = dma.vmem_to_hbm [thread:$0]  %s89_s7, 128, %s237_s2, [#allocation5]  }
  0x37   :  { %177 = dma.done.wait [#allocation5], 128  }
  0x38   :  { %178 = vsyncadd [#allocation5], 4294967168 }
  0x39   :  { %95 = vsyncpa [#allocation4], 1 }
  0x3a   :  { %96 = vsyncpa [#allocation7], 1 }
  0x3b   :  { %97 = vsyncpa [#allocation5], 1 }

</bundles_post_ra>
